<compile_context>
chip_gen: v6e
topology: v6e:2x2x1
jax: 0.10.0
libtpu: 0.0.40
codegen_flags: <defaults>
</compile_context>

<pallas_src>
import jax
import jax.numpy as jnp
from jax.experimental import pallas as pl
from jax.experimental.pallas import tpu as pltpu


def _round_up(n, m):
    return ((n + m - 1) // m) * m


def _mlp_logsoftmax_kernel(x_ref, w1_ref, b1_ref, w2_ref, b2_ref, o_ref):
    # x_ref:  [tb, in_dim]    f32  (cast to bf16 in-kernel for the MXU)
    # w1_ref: [in_dim, HID_P] bf16           b1_ref: [1, HID_P] f32
    # w2_ref: [HID_P, out]    bf16 (1/T folded)   b2_ref: [1, out] f32 (1/T folded)
    x = x_ref[...].astype(jnp.bfloat16)
    h = jnp.dot(x, w1_ref[...], preferred_element_type=jnp.float32)      # MXU
    h = jnp.maximum(h + b1_ref[...], 0.0)                                # f32 VPU
    z = jnp.dot(h.astype(jnp.bfloat16), w2_ref[...],
                preferred_element_type=jnp.float32)                      # MXU
    z = z + b2_ref[...]                                                  # 1/T already folded
    # Numerically stable log_softmax over the class (lane) dimension.
    m = jnp.max(z, axis=1, keepdims=True)
    s = z - m
    lse = jnp.log(jnp.sum(jnp.exp(s), axis=1, keepdims=True))
    o_ref[...] = (s - lse).astype(o_ref.dtype)


def prepare_params(w1, b1, w2, b2, T=0.2):
    """One-time (init-time) parameter prep — NOT on the per-forward-call path.

    Pads the hidden dim to a multiple of 128 lanes (zero-padded: padded hidden
    units contribute exactly 0 through the zero rows of w2), folds 1/T into the
    second layer, and casts the matmul operands to bf16 for the MXU.
    """
    in_dim, hid_dim = w1.shape
    out_dim = w2.shape[1]
    HID_P = _round_up(hid_dim, 128)
    inv_T = 1.0 / T
    w1_p = jnp.pad(w1, ((0, 0), (0, HID_P - hid_dim))).astype(jnp.bfloat16)
    b1_p = jnp.pad(b1.reshape(1, hid_dim),
                   ((0, 0), (0, HID_P - hid_dim))).astype(jnp.float32)
    w2_p = jnp.pad(w2 * inv_T, ((0, HID_P - hid_dim), (0, 0))).astype(jnp.bfloat16)
    b2_p = (b2.reshape(1, out_dim) * inv_T).astype(jnp.float32)
    return w1_p, b1_p, w2_p, b2_p


def mlp_forward(x, w1_p, b1_p, w2_p, b2_p, tile_b=512):
    """x: [B, in_dim] f32 (unpadded).  Params are the init-time prepared tensors."""
    B, in_dim = x.shape
    assert w1_p.shape[0] == in_dim
    HID_P = w1_p.shape[1]
    out_dim = w2_p.shape[1]

    # --- batch tile selection: no batch padding, ragged last block is fine. ---
    if B <= 8:
        tb = B                                   # single block == full batch dim (legal)
    else:
        # >=2 grid steps so dimension_semantics=("parallel",) can shard across both
        # v7x TensorCores, and balanced so we never do ~2x wasted work near a boundary.
        n_steps = max(pl.cdiv(B, tile_b), 2)
        tb = _round_up(pl.cdiv(B, n_steps), 8)

    def vmem_bytes(t, w_bufs):
        return (2 * t * in_dim * 4                      # x tile, f32, double-buffered
                + 2 * t * out_dim * 4                   # out tile, f32, double-buffered
                + w_bufs * 2 * (in_dim * HID_P + HID_P * out_dim)   # bf16 weights
                + w_bufs * 4 * (HID_P + out_dim))                   # f32 biases

    budget = 48 * 1024 * 1024    # conservative: leaves headroom even on v7x's 64 MiB VMEM
    while tb > 8 and vmem_bytes(tb, 1) > budget:
        tb = max(8, _round_up(tb // 2, 8))
    # NOTE: for production-scale hid/out where W1+W2 alone exceed the budget, the right
    # move is a second "arbitrary" grid axis over HID_P with an f32 accumulator scratch.
    vmem_limit = int(min(max(vmem_bytes(tb, 2) + (8 << 20), 32 << 20), 64 << 20))

    grid = (pl.cdiv(B, tb),)

    def build(single_buffer_weights):
        wkw = dict(pipeline_mode=pl.Buffered(1)) if single_buffer_weights else {}
        in_specs = [
            pl.BlockSpec((tb, in_dim), lambda i: (i, 0)),              # batch-tiled, pipelined
            pl.BlockSpec((in_dim, HID_P), lambda i: (0, 0), **wkw),    # weights VMEM-resident
            pl.BlockSpec((1, HID_P), lambda i: (0, 0), **wkw),
            pl.BlockSpec((HID_P, out_dim), lambda i: (0, 0), **wkw),
            pl.BlockSpec((1, out_dim), lambda i: (0, 0), **wkw),
        ]
        return pl.pallas_call(
            _mlp_logsoftmax_kernel,
            out_shape=jax.ShapeDtypeStruct((B, out_dim), jnp.float32),
            grid=grid,
            in_specs=in_specs,
            out_specs=pl.BlockSpec((tb, out_dim), lambda i: (i, 0)),
            compiler_params=pltpu.CompilerParams(
                dimension_semantics=("parallel",),
                vmem_limit_bytes=vmem_limit,
            ),
        )

    try:
        # Preferred: single-buffer the grid-invariant weight/bias blocks.
        return build(True)(x, w1_p, b1_p, w2_p, b2_p)
    except Exception:
        # Fallback if this Pallas build rejects pipeline_mode=Buffered(1):
        # identical semantics, just default double-buffered weights.
        return build(False)(x, w1_p, b1_p, w2_p, b2_p)


def init_params(key, in_dim, hid_dim, out_dim):
    # Deterministic synthetic init (mimics nn.Linear uniform(-1/sqrt(fan_in), +)).
    k1, k2, k3, k4 = jax.random.split(key, 4)
    lim1 = 1.0 / jnp.sqrt(in_dim)
    lim2 = 1.0 / jnp.sqrt(hid_dim)
    w1 = jax.random.uniform(k1, (in_dim, hid_dim), jnp.float32, -lim1, lim1)
    b1 = jax.random.uniform(k2, (1, hid_dim), jnp.float32, -lim1, lim1)
    w2 = jax.random.uniform(k3, (hid_dim, out_dim), jnp.float32, -lim2, lim2)
    b2 = jax.random.uniform(k4, (1, out_dim), jnp.float32, -lim2, lim2)
    return w1, b1, w2, b2


if __name__ == "__main__":
    B, in_dim, hid_dim, out_dim = 8, 32, 64, 16
    T = 0.2
    key = jax.random.PRNGKey(0)
    kx, kp = jax.random.split(key)
    x = jax.random.normal(kx, (B, in_dim), jnp.float32)
    w1, b1, w2, b2 = init_params(kp, in_dim, hid_dim, out_dim)

    # One-time parameter prep (hoisted out of the forward path).
    w1_p, b1_p, w2_p, b2_p = prepare_params(w1, b1, w2, b2, T=T)

    out = mlp_forward(x, w1_p, b1_p, w2_p, b2_p)
    out = jax.block_until_ready(out)
    assert out.shape == (B, out_dim)

    # Reference 1: mirrors kernel precision (bf16 MXU operands, f32 accumulation).
    inv_T = 1.0 / T
    xb = x.astype(jnp.bfloat16)
    w1b = w1.astype(jnp.bfloat16)
    w2b = (w2 * inv_T).astype(jnp.bfloat16)
    h_ref = jnp.maximum(jnp.dot(xb, w1b, preferred_element_type=jnp.float32) + b1, 0.0)
    z_ref = jnp.dot(h_ref.astype(jnp.bfloat16), w2b,
                    preferred_element_type=jnp.float32) + b2 * inv_T
    ref_bf16 = jax.nn.log_softmax(z_ref, axis=1)
    assert jnp.allclose(out, ref_bf16, atol=2e-3, rtol=2e-3)

    # Reference 2: full f32 math (same as the PyTorch module) — loose sanity check.
    h32 = jnp.maximum(x @ w1 + b1, 0.0)
    ref_f32 = jax.nn.log_softmax((h32 @ w2 + b2) / T, axis=1)
    assert jnp.allclose(out, ref_f32, atol=1e-1, rtol=1e-1)

    print("KERNEL_OK")
</pallas_src>

<mosaic_0001>
module attributes {stable_mosaic.version = 11 : i64} {
  func.func @_mlp_logsoftmax_kernel(%arg0: i32, %arg1: memref<8x32xf32, #tpu.memory_space<vmem>>, %arg2: memref<32x128xbf16, #tpu.memory_space<vmem>>, %arg3: memref<1x128xf32, #tpu.memory_space<vmem>>, %arg4: memref<128x16xbf16, #tpu.memory_space<vmem>>, %arg5: memref<1x16xf32, #tpu.memory_space<vmem>>, %arg6: memref<8x16xf32, #tpu.memory_space<vmem>>) attributes {dimension_semantics = [#tpu.dimension_semantics<parallel>], iteration_bounds = array<i64: 1>, scalar_prefetch = 0 : i64, scratch_operands = 0 : i64, tpu.core_type = #tpu.core_type<tc>, window_params = [{transform_indices = @transform_0, window_bounds = array<i64: 8, 32>}, {pipeline_mode = #tpu.pipeline_mode<synchronous>, transform_indices = @transform_1, window_bounds = array<i64: 32, 128>}, {pipeline_mode = #tpu.pipeline_mode<synchronous>, transform_indices = @transform_2, window_bounds = array<i64: 1, 128>}, {pipeline_mode = #tpu.pipeline_mode<synchronous>, transform_indices = @transform_3, window_bounds = array<i64: 128, 16>}, {pipeline_mode = #tpu.pipeline_mode<synchronous>, transform_indices = @transform_4, window_bounds = array<i64: 1, 16>}, {transform_indices = @transform_5, window_bounds = array<i64: 8, 16>}]} {
    %c0 = arith.constant 0 : index
    %c0_0 = arith.constant 0 : index
    %0 = vector.load %arg1[%c0, %c0_0] : memref<8x32xf32, #tpu.memory_space<vmem>>, vector<8x32xf32>
    %1 = arith.truncf %0 : vector<8x32xf32> to vector<8x32xbf16>
    %c0_1 = arith.constant 0 : index
    %c0_2 = arith.constant 0 : index
    %2 = vector.load %arg2[%c0_1, %c0_2] : memref<32x128xbf16, #tpu.memory_space<vmem>>, vector<32x128xbf16>
    %cst = arith.constant dense<0.000000e+00> : vector<8x128xf32>
    %3 = tpu.matmul %1, %2, %cst {dimension_numbers = #tpu.dot_dimension_numbers<[1], [0], [0], [1], [0, 0, 1, 1], [], []>} : vector<8x32xbf16>, vector<32x128xbf16>, vector<8x128xf32> -> vector<8x128xf32>
    %c0_3 = arith.constant 0 : index
    %c0_4 = arith.constant 0 : index
    %4 = vector.load %arg3[%c0_3, %c0_4] : memref<1x128xf32, #tpu.memory_space<vmem>>, vector<1x128xf32>
    %5 = vector.broadcast %4 : vector<1x128xf32> to vector<8x128xf32>
    %6 = arith.addf %3, %5 : vector<8x128xf32>
    %cst_5 = arith.constant 0.000000e+00 : f32
    %7 = vector.broadcast %cst_5 : f32 to vector<8x128xf32>
    %8 = arith.maximumf %6, %7 : vector<8x128xf32>
    %9 = arith.truncf %8 : vector<8x128xf32> to vector<8x128xbf16>
    %c0_6 = arith.constant 0 : index
    %c0_7 = arith.constant 0 : index
    %10 = vector.load %arg4[%c0_6, %c0_7] : memref<128x16xbf16, #tpu.memory_space<vmem>>, vector<128x16xbf16>
    %cst_8 = arith.constant dense<0.000000e+00> : vector<8x16xf32>
    %11 = tpu.matmul %9, %10, %cst_8 {dimension_numbers = #tpu.dot_dimension_numbers<[1], [0], [0], [1], [0, 0, 1, 1], [], []>} : vector<8x128xbf16>, vector<128x16xbf16>, vector<8x16xf32> -> vector<8x16xf32>
    %c0_9 = arith.constant 0 : index
    %c0_10 = arith.constant 0 : index
    %12 = vector.load %arg5[%c0_9, %c0_10] : memref<1x16xf32, #tpu.memory_space<vmem>>, vector<1x16xf32>
    %13 = vector.broadcast %12 : vector<1x16xf32> to vector<8x16xf32>
    %14 = arith.addf %11, %13 : vector<8x16xf32>
    %cst_11 = arith.constant dense<0xFF800000> : vector<8xf32>
    %15 = vector.multi_reduction <maximumf>, %14, %cst_11 [1] : vector<8x16xf32> to vector<8xf32>
    %16 = vector.shape_cast %15 : vector<8xf32> to vector<8x1xf32>
    %17 = vector.broadcast %16 : vector<8x1xf32> to vector<8x16xf32>
    %18 = arith.subf %14, %17 : vector<8x16xf32>
    %19 = math.exp %18 : vector<8x16xf32>
    %cst_12 = arith.constant dense<0.000000e+00> : vector<8xf32>
    %20 = vector.multi_reduction <add>, %19, %cst_12 [1] : vector<8x16xf32> to vector<8xf32>
    %21 = vector.shape_cast %20 : vector<8xf32> to vector<8x1xf32>
    %22 = math.log %21 : vector<8x1xf32>
    %23 = vector.broadcast %22 : vector<8x1xf32> to vector<8x16xf32>
    %24 = arith.subf %18, %23 : vector<8x16xf32>
    %c0_13 = arith.constant 0 : index
    %c0_14 = arith.constant 0 : index
    %25 = vector.load %arg6[%c0_13, %c0_14] : memref<8x16xf32, #tpu.memory_space<vmem>>, vector<8x16xf32>
    tpu.vector_store %arg6[%c0_13, %c0_14], %24 {strides = array<i32>} : memref<8x16xf32, #tpu.memory_space<vmem>>, vector<8x16xf32>,
    return
  }
  func.func @transform_0(%arg0: i32) -> (i32, i32) {
    %c0_i32 = arith.constant 0 : i32
    %c0_i32_0 = arith.constant 0 : i32
    return %arg0, %c0_i32 : i32, i32
  }
  func.func @transform_1(%arg0: i32) -> (i32, i32) {
    %c0_i32 = arith.constant 0 : i32
    %c0_i32_0 = arith.constant 0 : i32
    %c0_i32_1 = arith.constant 0 : i32
    return %c0_i32, %c0_i32_0 : i32, i32
  }
  func.func @transform_2(%arg0: i32) -> (i32, i32) {
    %c0_i32 = arith.constant 0 : i32
    %c0_i32_0 = arith.constant 0 : i32
    %c0_i32_1 = arith.constant 0 : i32
    return %c0_i32, %c0_i32_0 : i32, i32
  }
  func.func @transform_3(%arg0: i32) -> (i32, i32) {
    %c0_i32 = arith.constant 0 : i32
    %c0_i32_0 = arith.constant 0 : i32
    %c0_i32_1 = arith.constant 0 : i32
    return %c0_i32, %c0_i32_0 : i32, i32
  }
  func.func @transform_4(%arg0: i32) -> (i32, i32) {
    %c0_i32 = arith.constant 0 : i32
    %c0_i32_0 = arith.constant 0 : i32
    %c0_i32_1 = arith.constant 0 : i32
    return %c0_i32, %c0_i32_0 : i32, i32
  }
  func.func @transform_5(%arg0: i32) -> (i32, i32) {
    %c0_i32 = arith.constant 0 : i32
    %c0_i32_0 = arith.constant 0 : i32
    return %arg0, %c0_i32 : i32, i32
  }
}

module attributes {stable_mosaic.version = 11 : i64} {
  func.func @_mlp_logsoftmax_kernel(%arg0: i32, %arg1: memref<8x32xf32, #tpu.memory_space<vmem>>, %arg2: memref<32x128xbf16, #tpu.memory_space<vmem>>, %arg3: memref<1x128xf32, #tpu.memory_space<vmem>>, %arg4: memref<128x16xbf16, #tpu.memory_space<vmem>>, %arg5: memref<1x16xf32, #tpu.memory_space<vmem>>, %arg6: memref<8x16xf32, #tpu.memory_space<vmem>>) attributes {dimension_semantics = [#tpu.dimension_semantics<parallel>], iteration_bounds = array<i64: 1>, scalar_prefetch = 0 : i64, scratch_operands = 0 : i64, tpu.core_type = #tpu.core_type<tc>, window_params = [{transform_indices = @transform_0, window_bounds = array<i64: 8, 32>}, {pipeline_mode = #tpu.pipeline_mode<synchronous>, transform_indices = @transform_1, window_bounds = array<i64: 32, 128>}, {pipeline_mode = #tpu.pipeline_mode<synchronous>, transform_indices = @transform_2, window_bounds = array<i64: 1, 128>}, {pipeline_mode = #tpu.pipeline_mode<synchronous>, transform_indices = @transform_3, window_bounds = array<i64: 128, 16>}, {pipeline_mode = #tpu.pipeline_mode<synchronous>, transform_indices = @transform_4, window_bounds = array<i64: 1, 16>}, {transform_indices = @transform_5, window_bounds = array<i64: 8, 16>}]} {
    %c0 = arith.constant 0 : index
    %c0_0 = arith.constant 0 : index
    %0 = vector.load %arg1[%c0, %c0_0] : memref<8x32xf32, #tpu.memory_space<vmem>>, vector<8x32xf32>
    %1 = arith.truncf %0 : vector<8x32xf32> to vector<8x32xbf16>
    %c0_1 = arith.constant 0 : index
    %c0_2 = arith.constant 0 : index
    %2 = vector.load %arg2[%c0_1, %c0_2] : memref<32x128xbf16, #tpu.memory_space<vmem>>, vector<32x128xbf16>
    %cst = arith.constant dense<0.000000e+00> : vector<8x128xf32>
    %3 = tpu.matmul %1, %2, %cst {dimension_numbers = #tpu.dot_dimension_numbers<[1], [0], [0], [1], [0, 0, 1, 1], [], []>} : vector<8x32xbf16>, vector<32x128xbf16>, vector<8x128xf32> -> vector<8x128xf32>
    %c0_3 = arith.constant 0 : index
    %c0_4 = arith.constant 0 : index
    %4 = vector.load %arg3[%c0_3, %c0_4] : memref<1x128xf32, #tpu.memory_space<vmem>>, vector<1x128xf32>
    %5 = vector.broadcast %4 : vector<1x128xf32> to vector<8x128xf32>
    %6 = arith.addf %3, %5 : vector<8x128xf32>
    %cst_5 = arith.constant 0.000000e+00 : f32
    %7 = vector.broadcast %cst_5 : f32 to vector<8x128xf32>
    %8 = arith.maximumf %6, %7 : vector<8x128xf32>
    %9 = arith.truncf %8 : vector<8x128xf32> to vector<8x128xbf16>
    %c0_6 = arith.constant 0 : index
    %c0_7 = arith.constant 0 : index
    %10 = vector.load %arg4[%c0_6, %c0_7] : memref<128x16xbf16, #tpu.memory_space<vmem>>, vector<128x16xbf16>
    %cst_8 = arith.constant dense<0.000000e+00> : vector<8x16xf32>
    %11 = tpu.matmul %9, %10, %cst_8 {dimension_numbers = #tpu.dot_dimension_numbers<[1], [0], [0], [1], [0, 0, 1, 1], [], []>} : vector<8x128xbf16>, vector<128x16xbf16>, vector<8x16xf32> -> vector<8x16xf32>
    %c0_9 = arith.constant 0 : index
    %c0_10 = arith.constant 0 : index
    %12 = vector.load %arg5[%c0_9, %c0_10] : memref<1x16xf32, #tpu.memory_space<vmem>>, vector<1x16xf32>
    %13 = vector.broadcast %12 : vector<1x16xf32> to vector<8x16xf32>
    %14 = arith.addf %11, %13 : vector<8x16xf32>
    %cst_11 = arith.constant dense<0xFF800000> : vector<8xf32>
    %15 = vector.multi_reduction <maximumf>, %14, %cst_11 [1] : vector<8x16xf32> to vector<8xf32>
    %16 = vector.shape_cast %15 : vector<8xf32> to vector<8x1xf32>
    %17 = vector.broadcast %16 : vector<8x1xf32> to vector<8x16xf32>
    %18 = arith.subf %14, %17 : vector<8x16xf32>
    %19 = math.exp %18 : vector<8x16xf32>
    %cst_12 = arith.constant dense<0.000000e+00> : vector<8xf32>
    %20 = vector.multi_reduction <add>, %19, %cst_12 [1] : vector<8x16xf32> to vector<8xf32>
    %21 = vector.shape_cast %20 : vector<8xf32> to vector<8x1xf32>
    %22 = math.log %21 : vector<8x1xf32>
    %23 = vector.broadcast %22 : vector<8x1xf32> to vector<8x16xf32>
    %24 = arith.subf %18, %23 : vector<8x16xf32>
    %c0_13 = arith.constant 0 : index
    %c0_14 = arith.constant 0 : index
    %25 = vector.load %arg6[%c0_13, %c0_14] : memref<8x16xf32, #tpu.memory_space<vmem>>, vector<8x16xf32>
    tpu.vector_store %arg6[%c0_13, %c0_14], %24 {strides = array<i32>} : memref<8x16xf32, #tpu.memory_space<vmem>>, vector<8x16xf32>,
    return
  }
  func.func @transform_0(%arg0: i32) -> (i32, i32) {
    %c0_i32 = arith.constant 0 : i32
    %c0_i32_0 = arith.constant 0 : i32
    return %arg0, %c0_i32 : i32, i32
  }
  func.func @transform_1(%arg0: i32) -> (i32, i32) {
    %c0_i32 = arith.constant 0 : i32
    %c0_i32_0 = arith.constant 0 : i32
    %c0_i32_1 = arith.constant 0 : i32
    return %c0_i32, %c0_i32_0 : i32, i32
  }
  func.func @transform_2(%arg0: i32) -> (i32, i32) {
    %c0_i32 = arith.constant 0 : i32
    %c0_i32_0 = arith.constant 0 : i32
    %c0_i32_1 = arith.constant 0 : i32
    return %c0_i32, %c0_i32_0 : i32, i32
  }
  func.func @transform_3(%arg0: i32) -> (i32, i32) {
    %c0_i32 = arith.constant 0 : i32
    %c0_i32_0 = arith.constant 0 : i32
    %c0_i32_1 = arith.constant 0 : i32
    return %c0_i32, %c0_i32_0 : i32, i32
  }
  func.func @transform_4(%arg0: i32) -> (i32, i32) {
    %c0_i32 = arith.constant 0 : i32
    %c0_i32_0 = arith.constant 0 : i32
    %c0_i32_1 = arith.constant 0 : i32
    return %c0_i32, %c0_i32_0 : i32, i32
  }
  func.func @transform_5(%arg0: i32) -> (i32, i32) {
    %c0_i32 = arith.constant 0 : i32
    %c0_i32_0 = arith.constant 0 : i32
    return %arg0, %c0_i32 : i32, i32
  }
}

</mosaic_0001>

<bundles_post_ra>
// kernel: tpu_custom_call.1
= control target key start
LH: loop header
LB: loop body
LE: loop exit
PB: predicated region body
PF: predicated region fallthrough
CT: control target
= control target key end

     0   :  { %v324_v1 = vmov 0.0   ;;  %vm325_vm0 = vmmov 0   ;;  %vm47_vm1 = vcmask 261120   ;;  %s402_s0 = inlined_call_operand.vmem [shape: f32[8,32], index: 0, kind: input, shape index: {}]   ;;  %s403_s1 = inlined_call_operand.vmem [shape: bf16[32,128], index: 1, kind: input, shape index: {}]   ;;  %s404_s2 = inlined_call_operand.vmem [shape: f32[1,128], index: 2, kind: input, shape index: {}]   ;;  %s405_s3 = inlined_call_operand.vmem [shape: bf16[128,16], index: 3, kind: input, shape index: {}]   ;;  %s406_s4 = inlined_call_operand.vmem [shape: f32[1,16], index: 4, kind: input, shape index: {}]   ;;  %s407_s5 = inlined_call_operand.hbm [shape: f32[8,16], index: 5, kind: output, shape index: {}]  }
   0x1   :  { %v288_v0 = vld [vmem:[%s403_s1 + $0x8] sm:$0xff]   ;;  %257 = vmatprep.subr.bf16.mxu0 %v324_v1  ;;  %v289_v2 = vld [vmem:[%s403_s1] sm:$0xff]   ;;  %265 = vmatprep.subr.bf16.mxu1 %v324_v1  ;;  %v290_v4 = vld [vmem:[%s405_s3 + $0x38] sm:$0xff]  }
   0x2   :  { %258 = vmatpush3.bf16.msra.mxu0 %v288_v0  ;;  %261 = vmatprep.mubr.msk.bf16.mxu0 %vm325_vm0, %v324_v1  ;;  %v22_v3 = vld [vmem:[%s402_s0] sm:$0xff]  ;;  %v291_v6 = vld [vmem:[%s405_s3 + $0x30] sm:$0xff]   ;;  %v292_v7 = vld [vmem:[%s405_s3 + $0x28] sm:$0xff]  }
   0x3   :  { %259 = vmatprep.subr.bf16.mxu0 %v324_v1  ;;  %281 = vmatprep.mubr.msk.bf16.mxu1 %vm325_vm0, %v324_v1  ;;  %v23_v5 = vpack.c.bf16 %v22_v3, %v22_v3 }
   0x4   :  { %266 = vmatpush3.bf16.msra.mxu1 %v290_v4 }
   0x5   :  { %267 = vmatprep.subr.bf16.mxu1 %v324_v1 }
   0x6   :  { %260 = vmatpush3.bf16.msra.mxu0 %v289_v2 }
   0x8   :  { %268 = vmatpush3.bf16.msra.mxu1 %v291_v6 }
   0x9   :  { %262 = vmatmul.mubr.msk.bf16.vlgmr.msra.gmra.mxu0 %vm47_vm1, %v23_v5  ;;  %269 = vmatprep.subr.bf16.mxu1 %v324_v1 }
   0xa   :  { %10 = vsyncpa [#allocation3], 0  ;;  %v293_v8 = vld [vmem:[%s405_s3 + $0x20] sm:$0xff]   ;;  %v294_v9 = vld [vmem:[%s405_s3 + $0x18] sm:$0xff]   ;;  %vm204_vm2 = vcmask 130048  }
   0xb   :  { %v295_v10 = vld [vmem:[%s405_s3 + $0x10] sm:$0xff]   ;;  %v296_v11 = vld [vmem:[%s405_s3 + $0x8] sm:$0xff]   ;;  %v297_v12 = vld [vmem:[%s405_s3] sm:$0xff]  }
   0xc   :  { %270 = vmatpush3.bf16.msra.mxu1 %v292_v7  ;;  %v232_v13 = vld [vmem:[%s404_s2] ss:$0 sm:$0xff]  ;;  %s326_s2 = smov [#allocation2]  }
   0xd   :  { %271 = vmatprep.subr.bf16.mxu1 %v324_v1  ;;  %v236_v21 = vld [vmem:[%s406_s4] ss:$0 sm:$0xff]  ;;  %s224_s3 = sshll.u32 %s326_s2, 4  ;;  %s225_s3 = int_to_ptr.vmem [resolvable:$true] %s224_s3 }
   0xe   :  { %s302_s4 = scalar_lea.vmem %s225_s3, 128  ;;  %p307_p1 = scmp.lt.s32.totalorder %s225_s3, %s225_s3 }
   0xf   :  { %p303_p0 = scmp.ne.s32.totalorder %s225_s3, %s302_s4  ;;  %p308_p2 = scmp.lt.s32.totalorder %s302_s4, %s302_s4 }
  0x10   :  { %272 = vmatpush3.bf16.msra.mxu1 %v293_v8 }
  0x11   :  { %273 = vmatprep.subr.bf16.mxu1 %v324_v1  ;;  %p309_p3 = por %p308_p2, %p307_p1 }
  0x13   :  { %p310_p4 = pnand %p309_p3, %p303_p0 }
  0x14   :  { %274 = vmatpush3.bf16.msra.mxu1 %v294_v9 }
  0x15   :  { %275 = vmatprep.subr.bf16.mxu1 %v324_v1 }
  0x18   :  { %276 = vmatpush3.bf16.msra.mxu1 %v295_v10 }
  0x19   :  { %277 = vmatprep.subr.bf16.mxu1 %v324_v1 }
  0x1c   :  { %278 = vmatpush3.bf16.msra.mxu1 %v296_v11 }
  0x1d   :  { %279 = vmatprep.subr.bf16.mxu1 %v324_v1 }
  0x20   :  { %280 = vmatpush3.bf16.msra.mxu1 %v297_v12 }
  0xc9   :  { %v85_v14 = vpop.f32.mrf.mxu0 }
  0xca   :  { %v86_v15 = vadd.f32 %v232_v13, %v85_v14 }
  0xcb   :  { %v263_v16 = vpop.f32.mrf.mxu0 }
  0xcc   :  { %v91_v17 = vmax.f32 %v86_v15, 0.0 }
  0xcd   :  { %v88_v18 = vpop.f32.mrf.mxu0 }
  0xce   :  { %v92_v19 = vpack.c.bf16 %v91_v17, %v91_v17 }
  0xcf   :  { %v264_v20 = vpop.f32.mrf.mxu0 }
  0xd0   :  { %282 = vmatmul.mubr.bf16.vlgmr.msra.gmra.mxu1 %v92_v19 }
 0x190   :  { %v198_v22 = vpop.f32.mrf.mxu1 }
 0x191   :  { %v199_v23 = vadd.f32 %v236_v21, %v198_v22 }
 0x192   :  { %v283_v24 = vpop.f32.mrf.mxu1 }
 0x193   :  { %v205_v25 = vsel %vm204_vm2, %v199_v23, -inf }
 0x194   :  { %206 = vmax.xlane.f32.xlu0 %v205_v25  ;;  %v201_v26 = vpop.f32.mrf.mxu1 }
 0x196   :  { %v284_v27 = vpop.f32.mrf.mxu1 }
 0x21d   :  { %v207_v28 = vpop.xlane.xlu0 %206 }
 0x21e   :  { %v208_v29 = vsub.f32 %v199_v23, %v207_v28 }
 0x220   :  { %v209_v30 = vmul.f32 1.442695, %v208_v29 }
 0x222   :  { %298 = vpow2.f32 %v209_v30 }
 0x22f   :  { %v299_v31 = vpop.eup %298 }
 0x230   :  { %v211_v32 = vsel %vm204_vm2, %v299_v31, 0.0 }
 0x231   :  { %212 = vadd.xlane.f32.xlu0 %v211_v32 }
 0x2ba   :  { %v213_v33 = vpop.xlane.xlu0 %212 }
 0x2bb   :  { %300 = vlog2.f32 %v213_v33 }
 0x2c8   :  { %v301_v34 = vpop.eup %300 }
 0x2c9   :  { %v215_v35 = vmul.f32 0.6931472, %v301_v34 }
 0x2cb   :  { %v216_v36 = vsub.f32 %v208_v29, %v215_v35 }
 0x2cd   :  { %217 = vst.msk [vmem:[#allocation2] sm:$0xff] %vm204_vm2, %v216_v36 }
 0x2ce   :  { %313 = shalt.err (!%p310_p4)
}
 0x2cf   :  { %227 = dma.vmem_to_hbm [thread:$0]  %s225_s3, 128, %s407_s5, [#allocation3]  }
 0x2d0   :  { %322 = dma.done.wait [#allocation3], 128  }
 0x2d1   :  { %323 = vsyncadd [#allocation3], 4294967168 }
 0x2d2   :  { %231 = vsyncpa [#allocation3], 1 }

// kernel: tpu_custom_call.1
= control target key start
LH: loop header
LB: loop body
LE: loop exit
PB: predicated region body
PF: predicated region fallthrough
CT: control target
= control target key end

     0   :  { %v324_v1 = vmov 0.0   ;;  %vm325_vm0 = vmmov 0   ;;  %vm47_vm1 = vcmask 261120   ;;  %s402_s0 = inlined_call_operand.vmem [shape: f32[8,32], index: 0, kind: input, shape index: {}]   ;;  %s403_s1 = inlined_call_operand.vmem [shape: bf16[32,128], index: 1, kind: input, shape index: {}]   ;;  %s404_s2 = inlined_call_operand.vmem [shape: f32[1,128], index: 2, kind: input, shape index: {}]   ;;  %s405_s3 = inlined_call_operand.vmem [shape: bf16[128,16], index: 3, kind: input, shape index: {}]   ;;  %s406_s4 = inlined_call_operand.vmem [shape: f32[1,16], index: 4, kind: input, shape index: {}]   ;;  %s407_s5 = inlined_call_operand.hbm [shape: f32[8,16], index: 5, kind: output, shape index: {}]  }
   0x1   :  { %v288_v0 = vld [vmem:[%s403_s1 + $0x8] sm:$0xff]   ;;  %257 = vmatprep.subr.bf16.mxu0 %v324_v1  ;;  %v289_v2 = vld [vmem:[%s403_s1] sm:$0xff]   ;;  %265 = vmatprep.subr.bf16.mxu1 %v324_v1  ;;  %v290_v4 = vld [vmem:[%s405_s3 + $0x38] sm:$0xff]  }
   0x2   :  { %258 = vmatpush3.bf16.msra.mxu0 %v288_v0  ;;  %261 = vmatprep.mubr.msk.bf16.mxu0 %vm325_vm0, %v324_v1  ;;  %v22_v3 = vld [vmem:[%s402_s0] sm:$0xff]  ;;  %v291_v6 = vld [vmem:[%s405_s3 + $0x30] sm:$0xff]   ;;  %v292_v7 = vld [vmem:[%s405_s3 + $0x28] sm:$0xff]  }
   0x3   :  { %259 = vmatprep.subr.bf16.mxu0 %v324_v1  ;;  %281 = vmatprep.mubr.msk.bf16.mxu1 %vm325_vm0, %v324_v1  ;;  %v23_v5 = vpack.c.bf16 %v22_v3, %v22_v3 }
   0x4   :  { %266 = vmatpush3.bf16.msra.mxu1 %v290_v4 }
   0x5   :  { %267 = vmatprep.subr.bf16.mxu1 %v324_v1 }
   0x6   :  { %260 = vmatpush3.bf16.msra.mxu0 %v289_v2 }
   0x8   :  { %268 = vmatpush3.bf16.msra.mxu1 %v291_v6 }
   0x9   :  { %262 = vmatmul.mubr.msk.bf16.vlgmr.msra.gmra.mxu0 %vm47_vm1, %v23_v5  ;;  %269 = vmatprep.subr.bf16.mxu1 %v324_v1 }
   0xa   :  { %10 = vsyncpa [#allocation3], 0  ;;  %v293_v8 = vld [vmem:[%s405_s3 + $0x20] sm:$0xff]   ;;  %v294_v9 = vld [vmem:[%s405_s3 + $0x18] sm:$0xff]   ;;  %vm204_vm2 = vcmask 130048  }
   0xb   :  { %v295_v10 = vld [vmem:[%s405_s3 + $0x10] sm:$0xff]   ;;  %v296_v11 = vld [vmem:[%s405_s3 + $0x8] sm:$0xff]   ;;  %v297_v12 = vld [vmem:[%s405_s3] sm:$0xff]  }
   0xc   :  { %270 = vmatpush3.bf16.msra.mxu1 %v292_v7  ;;  %v232_v13 = vld [vmem:[%s404_s2] ss:$0 sm:$0xff]  ;;  %s326_s2 = smov [#allocation2]  }
   0xd   :  { %271 = vmatprep.subr.bf16.mxu1 %v324_v1  ;;  %v236_v21 = vld [vmem:[%s406_s4] ss:$0 sm:$0xff]  ;;  %s224_s3 = sshll.u32 %s326_s2, 4  ;;  %s225_s3 = int_to_ptr.vmem [resolvable:$true] %s224_s3 }
   0xe   :  { %s302_s4 = scalar_lea.vmem %s225_s3, 128  ;;  %p307_p1 = scmp.lt.s32.totalorder %s225_s3, %s225_s3 }
   0xf   :  { %p303_p0 = scmp.ne.s32.totalorder %s225_s3, %s302_s4  ;;  %p308_p2 = scmp.lt.s32.totalorder %s302_s4, %s302_s4 }
  0x10   :  { %272 = vmatpush3.bf16.msra.mxu1 %v293_v8 }
  0x11   :  { %273 = vmatprep.subr.bf16.mxu1 %v324_v1  ;;  %p309_p3 = por %p308_p2, %p307_p1 }
  0x13   :  { %p310_p4 = pnand %p309_p3, %p303_p0 }
  0x14   :  { %274 = vmatpush3.bf16.msra.mxu1 %v294_v9 }
  0x15   :  { %275 = vmatprep.subr.bf16.mxu1 %v324_v1 }
  0x18   :  { %276 = vmatpush3.bf16.msra.mxu1 %v295_v10 }
  0x19   :  { %277 = vmatprep.subr.bf16.mxu1 %v324_v1 }
  0x1c   :  { %278 = vmatpush3.bf16.msra.mxu1 %v296_v11 }
  0x1d   :  { %279 = vmatprep.subr.bf16.mxu1 %v324_v1 }
  0x20   :  { %280 = vmatpush3.bf16.msra.mxu1 %v297_v12 }
  0xc9   :  { %v85_v14 = vpop.f32.mrf.mxu0 }
  0xca   :  { %v86_v15 = vadd.f32 %v232_v13, %v85_v14 }
  0xcb   :  { %v263_v16 = vpop.f32.mrf.mxu0 }
  0xcc   :  { %v91_v17 = vmax.f32 %v86_v15, 0.0 }
  0xcd   :  { %v88_v18 = vpop.f32.mrf.mxu0 }
  0xce   :  { %v92_v19 = vpack.c.bf16 %v91_v17, %v91_v17 }
  0xcf   :  { %v264_v20 = vpop.f32.mrf.mxu0 }
  0xd0   :  { %282 = vmatmul.mubr.bf16.vlgmr.msra.gmra.mxu1 %v92_v19 }
 0x190   :  { %v198_v22 = vpop.f32.mrf.mxu1 }
 0x191   :  { %v199_v23 = vadd.f32 %v236_v21, %v198_v22 }
 0x192   :  { %v283_v24 = vpop.f32.mrf.mxu1 }
 0x193   :  { %v205_v25 = vsel %vm204_vm2, %v199_v23, -inf }
 0x194   :  { %206 = vmax.xlane.f32.xlu0 %v205_v25  ;;  %v201_v26 = vpop.f32.mrf.mxu1 }
 0x196   :  { %v284_v27 = vpop.f32.mrf.mxu1 }
 0x21d   :  { %v207_v28 = vpop.xlane.xlu0 %206 }
 0x21e   :  { %v208_v29 = vsub.f32 %v199_v23, %v207_v28 }
 0x220   :  { %v209_v30 = vmul.f32 1.442695, %v208_v29 }
 0x222   :  { %298 = vpow2.f32 %v209_v30 }
 0x22f   :  { %v299_v31 = vpop.eup %298 }
 0x230   :  { %v211_v32 = vsel %vm204_vm2, %v299_v31, 0.0 }
 0x231   :  { %212 = vadd.xlane.f32.xlu0 %v211_v32 }
 0x2ba   :  { %v213_v33 = vpop.xlane.xlu0 %212 }
 0x2bb   :  { %300 = vlog2.f32 %v213_v33 }
 0x2c8   :  { %v301_v34 = vpop.eup %300 }
 0x2c9   :  { %v215_v35 = vmul.f32 0.6931472, %v301_v34 }
 0x2cb   :  { %v216_v36 = vsub.f32 %v208_v29, %v215_v35 }
 0x2cd   :  { %217 = vst.msk [vmem:[#allocation2] sm:$0xff] %vm204_vm2, %v216_v36 }
 0x2ce   :  { %313 = shalt.err (!%p310_p4)
}
 0x2cf   :  { %227 = dma.vmem_to_hbm [thread:$0]  %s225_s3, 128, %s407_s5, [#allocation3]  }
 0x2d0   :  { %322 = dma.done.wait [#allocation3], 128  }
 0x2d1   :  { %323 = vsyncadd [#allocation3], 4294967168 }
 0x2d2   :  { %231 = vsyncpa [#allocation3], 1 }

</bundles_post_ra>
